<compile_context>
chip_gen: v7x
topology: tpu7x:2x2x1
jax: 0.10.0
libtpu: 0.0.40
codegen_flags: <defaults>
</compile_context>

<pallas_src>
import jax
import jax.numpy as jnp
from jax import lax
from jax.experimental import pallas as pl
from jax.experimental.pallas import tpu as pltpu


def _pfe_fused_kernel(x_ref, w_ref, b_ref, o_ref):
    """Fused path: activation kept in its natural (B, F, T) layout.

    x_ref: (1, F, tile_T)   one batch row, time tile
    w_ref: (F, Ep)          W.T (zero-padded along E to a multiple of 128)
    b_ref: (1, Ep)          bias (padded to match)
    o_ref: (1, tile_T, Ep)

    out[t, e] = sum_f x[f, t] * w[f, e] + b[e]
    i.e. the permute(0, 2, 1) is folded into a transposed-LHS (TN) MXU feed.
    """
    y = lax.dot_general(
        x_ref[0],
        w_ref[...],
        dimension_numbers=(((0,), (0,)), ((), ())),
        preferred_element_type=jnp.float32,
    )  # (tile_T, Ep), f32 accumulation
    o_ref[0] = (y + b_ref[...]).astype(o_ref.dtype)


def _pfe_flat_kernel(x_ref, w_ref, b_ref, o_ref):
    """Flat path: plain lane-dense NN matmul on pre-flattened activations.

    x_ref: (tile_M, F), w_ref: (F, Ep), b_ref: (1, Ep), o_ref: (tile_M, Ep)
    """
    y = jnp.dot(x_ref[...], w_ref[...], preferred_element_type=jnp.float32)
    o_ref[...] = (y + b_ref[...]).astype(o_ref.dtype)


def prepare_params(weight, bias):
    """One-time parameter-side layout prep (call at init, NOT in the hot loop).

    weight: (emb_size, n_freq)   PyTorch nn.Linear layout
    bias:   (emb_size,)
    Returns (w_t, b2, emb_size) with
        w_t: (n_freq, Ep), b2: (1, Ep),
    where Ep is emb_size rounded up to a multiple of 128 so output stores are
    full-width vst rather than masked vst.msk.
    """
    emb, _ = weight.shape
    ep = ((emb + 127) // 128) * 128
    w_t = jnp.transpose(weight)            # (n_freq, emb)
    b2 = jnp.reshape(bias, (1, emb))
    if ep != emb:
        w_t = jnp.pad(w_t, ((0, 0), (0, ep - emb)))
        b2 = jnp.pad(b2, ((0, 0), (0, ep - emb)))
    return w_t, b2, emb


def patch_frequency_embedding(x, w_t, b2, emb_size, *, compute_dtype=None):
    """
    x:   (batch, n_freq, time)
    w_t: (n_freq, Ep), b2: (1, Ep)   -- from prepare_params()
    returns (batch, time, emb_size), dtype = x.dtype (or compute_dtype if given).
    """
    if compute_dtype is not None:
        # bf16 path: halves HBM traffic for x and the output; accumulation stays
        # f32 via preferred_element_type inside the kernels.
        x = x.astype(compute_dtype)
        w_t = w_t.astype(compute_dtype)
        b2 = b2.astype(compute_dtype)

    B, F, T = x.shape
    F2, Ep = w_t.shape
    assert F == F2, (F, F2)

    if T % 128 == 0:
        # ---- Fused path: no HBM transpose of x; permute folded into the MXU feed.
        if T % 512 == 0:
            tile_t = 512
        elif T % 256 == 0:
            tile_t = 256
        else:
            tile_t = 128
        grid = (B, T // tile_t)
        # TODO(synk): on v7x, if the short per-block compute (K=101) leaves DMA
        # exposed at depth 2, try pipeline_mode=pl.Buffered(3) on the x spec.
        out = pl.pallas_call(
            _pfe_fused_kernel,
            out_shape=jax.ShapeDtypeStruct((B, T, Ep), x.dtype),
            grid=grid,
            in_specs=[
                pl.BlockSpec((1, F, tile_t), lambda b, t: (b, 0, t)),
                pl.BlockSpec((F, Ep), lambda b, t: (0, 0)),   # VMEM-resident
                pl.BlockSpec((1, Ep), lambda b, t: (0, 0)),   # VMEM-resident
            ],
            out_specs=pl.BlockSpec((1, tile_t, Ep), lambda b, t: (b, t, 0)),
            compiler_params=pltpu.CompilerParams(
                dimension_semantics=("parallel", "parallel"),
                vmem_limit_bytes=32 * 1024 * 1024,
            ),
        )(x, w_t, b2)
    else:
        # ---- Flat path: small / unaligned T. One wrapper HBM pass to flatten,
        # then a lane-dense (B*T, F) @ (F, Ep) matmul tiled along M.
        M = B * T
        x2 = jnp.transpose(x, (0, 2, 1)).reshape(M, F)
        tile_m = M if M <= 512 else 512
        grid = (pl.cdiv(M, tile_m),)
        out = pl.pallas_call(
            _pfe_flat_kernel,
            out_shape=jax.ShapeDtypeStruct((M, Ep), x.dtype),
            grid=grid,
            in_specs=[
                pl.BlockSpec((tile_m, F), lambda i: (i, 0)),
                pl.BlockSpec((F, Ep), lambda i: (0, 0)),      # VMEM-resident
                pl.BlockSpec((1, Ep), lambda i: (0, 0)),      # VMEM-resident
            ],
            out_specs=pl.BlockSpec((tile_m, Ep), lambda i: (i, 0)),
            compiler_params=pltpu.CompilerParams(
                dimension_semantics=("parallel",),
                vmem_limit_bytes=32 * 1024 * 1024,
            ),
        )(x2, w_t, b2)
        out = out.reshape(B, T, Ep)

    if Ep != emb_size:
        out = out[..., :emb_size]
    return out


if __name__ == "__main__":
    # Module defaults: n_freq=101, emb_size=256. Small batch/time for the test.
    B, N_FREQ, EMB = 2, 101, 256

    key = jax.random.PRNGKey(0)
    kx1, kx2, kw, kb = jax.random.split(key, 4)

    # Deterministic synthetic parameters (same shapes as nn.Linear(n_freq, emb_size)).
    weight = jax.random.normal(kw, (EMB, N_FREQ), dtype=jnp.float32) * 0.02
    bias = jax.random.normal(kb, (EMB,), dtype=jnp.float32) * 0.01

    # One-time parameter prep, hoisted out of the per-step call.
    w_t, b2, emb = prepare_params(weight, bias)

    def ref_fn(xx):
        # PyTorch semantics in plain JAX, high precision.
        return (
            jnp.einsum("bft,ef->bte", xx, weight, precision=lax.Precision.HIGHEST)
            + bias
        )

    # 1) Toy shape (T < 128) -> flattened (B*T, F) path.
    T1 = 8
    x1 = jax.random.normal(kx1, (B, N_FREQ, T1), dtype=jnp.float32)
    out1 = jax.block_until_ready(patch_frequency_embedding(x1, w_t, b2, emb))
    ref1 = ref_fn(x1)
    assert out1.shape == (B, T1, EMB)
    assert jnp.allclose(out1, ref1, atol=5e-3, rtol=5e-3), float(
        jnp.max(jnp.abs(out1 - ref1))
    )

    # 2) Lane-dense T (multiple of 128) -> fused gridded path (no HBM transpose,
    #    2x2 "parallel" grid, resident weights).
    T2 = 256
    x2 = jax.random.normal(kx2, (B, N_FREQ, T2), dtype=jnp.float32)
    out2 = jax.block_until_ready(patch_frequency_embedding(x2, w_t, b2, emb))
    ref2 = ref_fn(x2)
    assert out2.shape == (B, T2, EMB)
    assert jnp.allclose(out2, ref2, atol=5e-3, rtol=5e-3), float(
        jnp.max(jnp.abs(out2 - ref2))
    )

    # 3) bf16 compute path (f32 MXU accumulation), loose tolerance vs f32 ref.
    out3 = jax.block_until_ready(
        patch_frequency_embedding(x2, w_t, b2, emb, compute_dtype=jnp.bfloat16)
    )
    assert out3.dtype == jnp.bfloat16
    assert out3.shape == (B, T2, EMB)
    assert jnp.allclose(out3.astype(jnp.float32), ref2, atol=5e-2, rtol=5e-2), float(
        jnp.max(jnp.abs(out3.astype(jnp.float32) - ref2))
    )

    print("KERNEL_OK")
</pallas_src>

<mosaic_0001>
module attributes {stable_mosaic.version = 11 : i64} {
  func.func @_pfe_flat_kernel(%arg0: i32, %arg1: memref<16x101xf32, #tpu.memory_space<vmem>>, %arg2: memref<101x256xf32, #tpu.memory_space<vmem>>, %arg3: memref<1x256xf32, #tpu.memory_space<vmem>>, %arg4: memref<16x256xf32, #tpu.memory_space<vmem>>) attributes {dimension_semantics = [#tpu.dimension_semantics<parallel>], iteration_bounds = array<i64: 1>, scalar_prefetch = 0 : i64, scratch_operands = 0 : i64, tpu.core_type = #tpu.core_type<tc>, window_params = [{transform_indices = @transform_0, window_bounds = array<i64: 16, 101>}, {pipeline_mode = #tpu.pipeline_mode<synchronous>, transform_indices = @transform_1, window_bounds = array<i64: 101, 256>}, {pipeline_mode = #tpu.pipeline_mode<synchronous>, transform_indices = @transform_2, window_bounds = array<i64: 1, 256>}, {transform_indices = @transform_3, window_bounds = array<i64: 16, 256>}]} {
    %c0 = arith.constant 0 : index
    %c0_0 = arith.constant 0 : index
    %0 = vector.load %arg1[%c0, %c0_0] : memref<16x101xf32, #tpu.memory_space<vmem>>, vector<16x101xf32>
    %c0_1 = arith.constant 0 : index
    %c0_2 = arith.constant 0 : index
    %1 = vector.load %arg2[%c0_1, %c0_2] : memref<101x256xf32, #tpu.memory_space<vmem>>, vector<101x256xf32>
    %cst = arith.constant dense<0.000000e+00> : vector<16x256xf32>
    %2 = tpu.matmul %0, %1, %cst {dimension_numbers = #tpu.dot_dimension_numbers<[1], [0], [0], [1], [0, 0, 1, 1], [], []>} : vector<16x101xf32>, vector<101x256xf32>, vector<16x256xf32> -> vector<16x256xf32>
    %c0_3 = arith.constant 0 : index
    %c0_4 = arith.constant 0 : index
    %3 = vector.load %arg3[%c0_3, %c0_4] : memref<1x256xf32, #tpu.memory_space<vmem>>, vector<1x256xf32>
    %4 = vector.broadcast %3 : vector<1x256xf32> to vector<16x256xf32>
    %5 = arith.addf %2, %4 : vector<16x256xf32>
    %c0_5 = arith.constant 0 : index
    %c0_6 = arith.constant 0 : index
    %6 = vector.load %arg4[%c0_5, %c0_6] : memref<16x256xf32, #tpu.memory_space<vmem>>, vector<16x256xf32>
    tpu.vector_store %arg4[%c0_5, %c0_6], %5 {strides = array<i32>} : memref<16x256xf32, #tpu.memory_space<vmem>>, vector<16x256xf32>,
    return
  }
  func.func @transform_0(%arg0: i32) -> (i32, i32) {
    %c0_i32 = arith.constant 0 : i32
    %c0_i32_0 = arith.constant 0 : i32
    return %arg0, %c0_i32 : i32, i32
  }
  func.func @transform_1(%arg0: i32) -> (i32, i32) {
    %c0_i32 = arith.constant 0 : i32
    %c0_i32_0 = arith.constant 0 : i32
    %c0_i32_1 = arith.constant 0 : i32
    return %c0_i32, %c0_i32_0 : i32, i32
  }
  func.func @transform_2(%arg0: i32) -> (i32, i32) {
    %c0_i32 = arith.constant 0 : i32
    %c0_i32_0 = arith.constant 0 : i32
    %c0_i32_1 = arith.constant 0 : i32
    return %c0_i32, %c0_i32_0 : i32, i32
  }
  func.func @transform_3(%arg0: i32) -> (i32, i32) {
    %c0_i32 = arith.constant 0 : i32
    %c0_i32_0 = arith.constant 0 : i32
    return %arg0, %c0_i32 : i32, i32
  }
}

</mosaic_0001>

<bundles_post_ra>
// kernel: tpu_custom_call.1
= control target key start
LH: loop header
LB: loop body
LE: loop exit
PB: predicated region body
PF: predicated region fallthrough
CT: control target
= control target key end

     0   :  { %8 = vsyncpa [#allocation3], 0  ;;  %s391_s0 = inlined_call_operand.hbm [shape: f32[16,101], index: 0, kind: input, shape index: {}]   ;;  %s392_s1 = inlined_call_operand.hbm [shape: f32[101,256], index: 1, kind: input, shape index: {}]   ;;  %s393_s2 = inlined_call_operand.vmem [shape: f32[1,256], index: 2, kind: input, shape index: {}]   ;;  %s394_s3 = inlined_call_operand.hbm [shape: f32[16,256], index: 3, kind: output, shape index: {}]  }
   0x1   :  { %9 = vsyncpa [#allocation6], 0 }
   0x2   :  { %10 = vsyncpa [#allocation4], 0  ;;  %s318_s12 = smov [#allocation2]   ;;  %s246_s16 = scalar_lea.hbm %s391_s0, 256 }
   0x3   :  { %s16_s13 = sshll.u32 %s318_s12, 4  ;;  %p247_p0 = scmp.ne.s32.totalorder %s391_s0, %s246_s16  ;;  %s17_s13 = int_to_ptr.vmem [resolvable:$true] %s16_s13 }
   0x4   :  { %p250_p1 = scmp.lt.u32.totalorder %s246_s16, %s391_s0 }
   0x6   :  { %p252_p2 = pnand %p250_p1, %p247_p0 }
   0x8   :  { %255 = shalt.err (!%p252_p2)
}
   0x9   :  { %s256_s21 = scalar_lea.vmem %s17_s13, 256  ;;  %p261_p4 = scmp.lt.s32.totalorder %s17_s13, %s17_s13 }
   0xa   :  { %p257_p3 = scmp.ne.s32.totalorder %s17_s13, %s256_s21  ;;  %p262_p5 = scmp.lt.s32.totalorder %s256_s21, %s256_s21 }
   0xc   :  { %p263_p6 = por %p262_p5, %p261_p4 }
   0xe   :  { %p264_p7 = pnand %p263_p6, %p257_p3 }
  0x10   :  { %267 = shalt.err (!%p264_p7)
}
  0x11   :  { %s319_s22 = smov 128   ;;  %s320_s23 = smov 8  }
  0x12   :  { %22 = dma.hbm_to_vmem [thread:$0]  %s391_s0, 256, %s17_s13, [#allocation3], %s319_s22, %s319_s22, %s320_s23  }
  0x13   :  { %s321_s26 = smov [#allocation5]   ;;  %s268_s30 = scalar_lea.hbm %s392_s1, 3328 }
  0x14   :  { %s28_s27 = sshll.u32 %s321_s26, 4  ;;  %p269_p8 = scmp.ne.s32.totalorder %s392_s1, %s268_s30  ;;  %s29_s27 = int_to_ptr.vmem [resolvable:$true] %s28_s27 }
  0x15   :  { %p272_p9 = scmp.lt.u32.totalorder %s268_s30, %s392_s1 }
  0x17   :  { %p274_p10 = pnand %p272_p9, %p269_p8 }
  0x19   :  { %277 = shalt.err (!%p274_p10)
}
  0x1a   :  { %s278_s8 = scalar_lea.vmem %s29_s27, 3328  ;;  %p283_p12 = scmp.lt.s32.totalorder %s29_s27, %s29_s27 }
  0x1b   :  { %p279_p11 = scmp.ne.s32.totalorder %s29_s27, %s278_s8  ;;  %p284_p13 = scmp.lt.s32.totalorder %s278_s8, %s278_s8 }
  0x1d   :  { %p285_p0 = por %p284_p13, %p283_p12 }
  0x1f   :  { %p286_p1 = pnand %p285_p0, %p279_p11 }
  0x21   :  { %289 = shalt.err (!%p286_p1)
}
  0x22   :  { %s322_s0 = smov 256   ;;  %s323_s9 = smov 16  }
  0x23   :  { %34 = dma.hbm_to_vmem [thread:$0]  %s392_s1, 3328, %s29_s27, [#allocation6], %s322_s0, %s322_s0, %s323_s9  }
  0x24   :  { %312 = dma.done.wait [#allocation3], 256  }
  0x25   :  { %313 = vsyncadd [#allocation3], 4294967040 }
  0x26   :  { %314 = dma.done.wait [#allocation6], 3328  }
  0x27   :  { %315 = vsyncadd [#allocation6], 4294963968  ;;  %v324_v0 = vmov 0.0   ;;  %v46_v1 = vld [vmem:[#allocation5 + $0x8] sm:$0xff]  ;;  %v48_v2 = vld [vmem:[#allocation5 + $0x18] sm:$0xff]  ;;  %vm90_vm0 = vcmask 1044480   ;;  %v73_v41 = vlaneseq }
  0x28   :  { %161 = vmatprep.mubr.f32.mxu0 %v324_v0  ;;  %167 = vmatprep.mubr.f32.mxu1 %v324_v0  ;;  %v45_v3 = vld [vmem:[#allocation5] sm:$0xff]  ;;  %v200_v4 = vpack.c.bf16 %v48_v2, %v46_v1  ;;  %v47_v5 = vld [vmem:[#allocation5 + $0x10] sm:$0xff]  ;;  %v50_v6 = vld [vmem:[#allocation5 + $0x28] sm:$0xff]  ;;  %vm83_vm1 = vcmask 826368   ;;  %s325_s13 = smov [#allocation7]  }
  0x29   :  { %v52_v7 = vld [vmem:[#allocation5 + $0x38] sm:$0xff]  ;;  %v202_v8 = vpack.c.bf16 %v47_v5, %v45_v3  ;;  %v49_v10 = vld [vmem:[#allocation5 + $0x20] sm:$0xff]  ;;  %v51_v11 = vld [vmem:[#allocation5 + $0x30] sm:$0xff]  ;;  %v74_v42 = vshrl.u32 %v73_v41, 7  ;;  %s183_s14 = sshll.u32 %s325_s13, 4  ;;  %s184_s14 = int_to_ptr.vmem [resolvable:$true] %s183_s14 }
  0x2a   :  { %v204_v9 = vpack.c.bf16 %v52_v7, %v50_v6  ;;  %v54_v12 = vld [vmem:[#allocation5 + $0x48] sm:$0xff]  ;;  %201 = vmatprep.subr.bf16.mxu0 %v200_v4  ;;  %224 = vmatprep.subr.bf16.mxu1 %v200_v4  ;;  %v56_v13 = vld [vmem:[#allocation5 + $0x58] sm:$0xff]  ;;  %v206_v14 = vpack.c.bf16 %v51_v11, %v49_v10  ;;  %v53_v16 = vld [vmem:[#allocation5 + $0x40] sm:$0xff]  ;;  %s290_s15 = scalar_lea.vmem %s184_s14, 512  ;;  %p295_p3 = scmp.lt.s32.totalorder %s184_s14, %s184_s14 }
  0x2b   :  { %203 = vmatpush1.bf16.msra.mxu0 %v202_v8  ;;  %231 = vmatpush1.bf16.msra.mxu1 %v202_v8  ;;  %v208_v15 = vpack.c.bf16 %v56_v13, %v54_v12  ;;  %v55_v17 = vld [vmem:[#allocation5 + $0x50] sm:$0xff]  ;;  %v58_v18 = vld [vmem:[#allocation5 + $0x68] sm:$0xff]  ;;  %v60_v19 = vld [vmem:[#allocation5 + $0x78] sm:$0xff]  ;;  %v75_v43 = vsub.s32 0, %v74_v42  ;;  %v79_v45 = vsub.s32 1, %v74_v42  ;;  %p291_p2 = scmp.ne.s32.totalorder %s184_s14, %s290_s15  ;;  %p296_p4 = scmp.lt.s32.totalorder %s290_s15, %s290_s15 }
  0x2c   :  { %205 = vmatprep.subr.bf16.mxu0 %v204_v9  ;;  %225 = vmatprep.subr.bf16.mxu1 %v204_v9  ;;  %v210_v20 = vpack.c.bf16 %v55_v17, %v53_v16  ;;  %v212_v21 = vpack.c.bf16 %v60_v19, %v58_v18  ;;  %v57_v22 = vld [vmem:[#allocation5 + $0x60] sm:$0xff]  ;;  %v59_v23 = vld [vmem:[#allocation5 + $0x70] sm:$0xff]  ;;  %v62_v24 = vld [vmem:[#allocation5 + $0x88] sm:$0xff] }
  0x2d   :  { %v64_v25 = vld [vmem:[#allocation5 + $0x98] sm:$0xff]  ;;  %v214_v26 = vpack.c.bf16 %v59_v23, %v57_v22  ;;  %v61_v28 = vld [vmem:[#allocation5 + $0x80] sm:$0xff]  ;;  %v63_v29 = vld [vmem:[#allocation5 + $0x90] sm:$0xff]  ;;  %p297_p5 = por %p296_p4, %p295_p3 }
  0x2e   :  { %v216_v27 = vpack.c.bf16 %v64_v25, %v62_v24  ;;  %v66_v30 = vld [vmem:[#allocation5 + $0xa8] sm:$0xff]  ;;  %v68_v31 = vld [vmem:[#allocation5 + $0xb8] sm:$0xff]  ;;  %v218_v32 = vpack.c.bf16 %v63_v29, %v61_v28  ;;  %v65_v34 = vld [vmem:[#allocation5 + $0xa0] sm:$0xff] }
  0x2f   :  { %207 = vmatpush1.bf16.msra.mxu0 %v206_v14  ;;  %232 = vmatpush1.bf16.msra.mxu1 %v206_v14  ;;  %v220_v33 = vpack.c.bf16 %v68_v31, %v66_v30  ;;  %v67_v35 = vld [vmem:[#allocation5 + $0xb0] sm:$0xff]  ;;  %v70_v37 = vld [vmem:[#allocation5 + $0xc8] sm:$0x1f]  ;;  %v69_v38 = vld [vmem:[#allocation5 + $0xc0] sm:$0x1f]  ;;  %p298_p6 = pnand %p297_p5, %p291_p2 }
  0x30   :  { %209 = vmatprep.subr.bf16.mxu0 %v208_v15  ;;  %226 = vmatprep.subr.bf16.mxu1 %v208_v15  ;;  %v222_v36 = vpack.c.bf16 %v67_v35, %v65_v34  ;;  %v43_v39 = vld [vmem:[#allocation2] sm:$0xff]  ;;  %v44_v40 = vld [vmem:[#allocation2 + $0x8] sm:$0xff] }
  0x31   :  { %v71_v44 = vld [vmem:[%s393_s2] sm:$0x3] }
  0x32   :  { %v76_v46 = vrot.slane %v71_v44, %v75_v43  ;;  %v80_v47 = vrot.slane %v71_v44, %v79_v45 }
  0x33   :  { %211 = vmatpush1.bf16.msra.mxu0 %v210_v20  ;;  %233 = vmatpush1.bf16.msra.mxu1 %v210_v20 }
  0x34   :  { %213 = vmatprep.subr.bf16.mxu0 %v212_v21  ;;  %227 = vmatprep.subr.bf16.mxu1 %v212_v21 }
  0x37   :  { %215 = vmatpush1.bf16.msra.mxu0 %v214_v26  ;;  %234 = vmatpush1.bf16.msra.mxu1 %v214_v26 }
  0x38   :  { %217 = vmatprep.subr.bf16.mxu0 %v216_v27  ;;  %228 = vmatprep.subr.bf16.mxu1 %v216_v27 }
  0x3b   :  { %219 = vmatpush1.bf16.msra.mxu0 %v218_v32  ;;  %235 = vmatpush1.bf16.msra.mxu1 %v218_v32 }
  0x3c   :  { %221 = vmatprep.subr.bf16.mxu0 %v220_v33  ;;  %229 = vmatprep.subr.bf16.mxu1 %v220_v33 }
  0x3f   :  { %223 = vmatpush1.bf16.msra.mxu0 %v222_v36  ;;  %236 = vmatpush1.bf16.msra.mxu1 %v222_v36 }
  0x40   :  { %196 = vmatprep.subr.msk.mxu0 %vm90_vm0, %v70_v37  ;;  %230 = vmatprep.subr.msk.mxu1 %vm90_vm0, %v70_v37 }
  0x43   :  { %197 = vmatpush1.msk.msra.mxu0 %vm90_vm0, %v69_v38  ;;  %237 = vmatpush1.msk.msra.mxu1 %vm90_vm0, %v69_v38 }
  0x44   :  { %198 = vmatmul.mubr.msk.f32.vlgmr.msra.gmra.mrb[0].mxu0 %vm83_vm1, %v43_v39  ;;  %199 = vmatmul.mubr.msk.f32.vlgmr.msra.gmra.mrb[0].mxu1 %vm83_vm1, %v44_v40 }
 0x117   :  { %v163_v48 = vpop.f32.mrb[0].mxu0  ;;  %v169_v49 = vpop.f32.mrb[0].mxu1 }
 0x118   :  { %v164_v50 = vadd.f32 %v163_v48, %v76_v46  ;;  %v170_v51 = vadd.f32 %v169_v49, %v76_v46  ;;  %v165_v52 = vpop.f32.mrb[1].mxu0  ;;  %v171_v53 = vpop.f32.mrb[1].mxu1 }
 0x119   :  { %v166_v54 = vadd.f32 %v165_v52, %v80_v47  ;;  %v172_v55 = vadd.f32 %v171_v53, %v80_v47 }
 0x11a   :  { %174 = vst [vmem:[#allocation7] sm:$0xff] %v164_v50  ;;  %176 = vst [vmem:[#allocation7 + $0x10] sm:$0xff] %v170_v51 }
 0x11b   :  { %175 = vst [vmem:[#allocation7 + $0x8] sm:$0xff] %v166_v54  ;;  %177 = vst [vmem:[#allocation7 + $0x18] sm:$0xff] %v172_v55 }
 0x11c   :  { %301 = shalt.err (!%p298_p6)
}
 0x11d   :  { %s302_s17 = scalar_lea.hbm %s394_s3, 512 }
 0x11e   :  { %p303_p7 = scmp.ne.s32.totalorder %s394_s3, %s302_s17  ;;  %p306_p8 = scmp.lt.u32.totalorder %s302_s17, %s394_s3 }
 0x120   :  { %p308_p9 = pnand %p306_p8, %p303_p7 }
 0x122   :  { %311 = shalt.err (!%p308_p9)
}
 0x123   :  { %189 = dma.vmem_to_hbm [thread:$0]  %s184_s14, 512, %s394_s3, [#allocation4], %s322_s0, %s322_s0, %s323_s9  }
 0x124   :  { %316 = dma.done.wait [#allocation4], 512  }
 0x125   :  { %317 = vsyncadd [#allocation4], 4294966784 }
 0x126   :  { %193 = vsyncpa [#allocation3], 1 }
 0x127   :  { %194 = vsyncpa [#allocation6], 1 }
 0x128   :  { %195 = vsyncpa [#allocation4], 1 }

</bundles_post_ra>
